<compile_context>
chip_gen: v6e
topology: v6e:2x2x1
jax: 0.10.0
libtpu: 0.0.40
codegen_flags: <defaults>
</compile_context>

<pallas_src>
import functools
import math

import jax
import jax.numpy as jnp
from jax.experimental import pallas as pl
from jax.experimental.pallas import tpu as pltpu

EPS = 1e-6
NEG_INF = -1e9


def _layernorm(x, g, b):
    # matches the reference module's LayerNorm:
    #   mean over last dim, *unbiased* std (N-1), eps added to std (not var)
    d = x.shape[-1]
    mean = jnp.mean(x, axis=-1, keepdims=True)
    var = jnp.sum((x - mean) ** 2, axis=-1, keepdims=True) / (d - 1)
    std = jnp.sqrt(var)
    return g * (x - mean) / (std + EPS) + b


def encoder_layer_kernel(x_ref, mask_ref,
                         wqkv_ref, bqkv_ref, wo_ref, bo_ref,
                         g1_ref, be1_ref, g2_ref, be2_ref,
                         w1_ref, b1_ref, w2_ref, b2_ref,
                         o_ref, *, num_heads, head_dim):
    H, dk = num_heads, head_dim
    HD = H * dk
    x = x_ref[...].astype(jnp.float32)            # [S, D]
    S = x.shape[0]

    # Hoisted mask work: one compare/select + one broadcast, reused by all heads.
    neg = jnp.where(mask_ref[...] == 0, NEG_INF, 0.0).astype(jnp.float32)  # [1, S]
    neg_b = jnp.broadcast_to(neg, (S, S))                                  # [S, S]

    # ---------- sublayer 0: pre-norm multi-head self-attention + residual ----------
    xn = _layernorm(x, g1_ref[...], be1_ref[...])                # f32 [S, D]
    xn_c = xn.astype(jnp.bfloat16)

    # Fused lane-dense QKV projection (one MXU matmul, f32 accumulation).
    qkv = jnp.dot(xn_c, wqkv_ref[...],
                  preferred_element_type=jnp.float32) + bqkv_ref[...]      # [S, 3*HD]
    scale = 1.0 / math.sqrt(dk)
    q_all = (qkv[:, 0 * HD:1 * HD] * scale).astype(jnp.bfloat16)  # scale folded into q
    k_all = qkv[:, 1 * HD:2 * HD].astype(jnp.bfloat16)
    v_all = qkv[:, 2 * HD:3 * HD].astype(jnp.bfloat16)

    # Per-head attention core (the [S,S] score matmuls are inherently per-head).
    # TODO(synk): for large S/H, tile queries and stream K/V blocks with an
    # online-softmax (flash) accumulator instead of materializing [S,S] per head.
    oh_list = []
    for h in range(H):
        qh = q_all[:, h * dk:(h + 1) * dk]
        kh = k_all[:, h * dk:(h + 1) * dk]
        vh = v_all[:, h * dk:(h + 1) * dk]
        s = jnp.dot(qh, kh.T, preferred_element_type=jnp.float32)          # [S, S]
        s = s + neg_b
        s = s - jnp.max(s, axis=-1, keepdims=True)
        e = jnp.exp(s)
        denom = jnp.sum(e, axis=-1, keepdims=True)                         # [S, 1]
        oh = jnp.dot(e.astype(jnp.bfloat16), vh,
                     preferred_element_type=jnp.float32)                   # [S, dk]
        # Deferred softmax normalization on [S, dk] via EUP approx reciprocal.
        oh_list.append(oh * pl.reciprocal(denom, approx=True))
    oh_all = jnp.concatenate(oh_list, axis=-1)                             # [S, HD]

    # Fused output projection: one [S, H*dk] x [H*dk, D] matmul (== concat + Wo).
    attn = jnp.dot(oh_all.astype(jnp.bfloat16), wo_ref[...],
                   preferred_element_type=jnp.float32) + bo_ref[...]
    x1 = x + attn   # dropout == identity

    # ---------- sublayer 1: pre-norm position-wise feed-forward + residual ----------
    xn2 = _layernorm(x1, g2_ref[...], be2_ref[...])
    h1 = jnp.dot(xn2.astype(jnp.bfloat16), w1_ref[...],
                 preferred_element_type=jnp.float32) + b1_ref[...]
    h1 = jnp.maximum(h1, 0.0)
    ff = jnp.dot(h1.astype(jnp.bfloat16), w2_ref[...],
                 preferred_element_type=jnp.float32) + b2_ref[...]
    o_ref[...] = (x1 + ff).astype(o_ref.dtype)


def encoder_layer(x, mask, p, *, num_heads):
    B, S, D = x.shape
    H = num_heads
    dk = D // H
    HD = H * dk
    cd = jnp.bfloat16

    # Wrapper-side fusion of the per-head projection weights into lane-dense,
    # bf16 matmul operands (biases stay f32).
    wqkv = jnp.concatenate([
        jnp.transpose(p["wq"], (1, 0, 2)).reshape(D, HD),
        jnp.transpose(p["wk"], (1, 0, 2)).reshape(D, HD),
        jnp.transpose(p["wv"], (1, 0, 2)).reshape(D, HD)], axis=-1).astype(cd)  # [D, 3HD]
    bqkv = jnp.concatenate([
        p["bq"].reshape(1, HD), p["bk"].reshape(1, HD), p["bv"].reshape(1, HD)],
        axis=-1).astype(jnp.float32)                                            # [1, 3HD]
    wo = p["wo"].reshape(HD, D).astype(cd)                                      # [HD, D]
    w1 = p["w1"].astype(cd)
    w2 = p["w2"].astype(cd)

    operands = (x, mask, wqkv, bqkv, wo, p["bo"], p["g1"], p["be1"],
                p["g2"], p["be2"], w1, p["b1"], w2, p["b2"])

    def full_spec(a):
        nd = a.ndim
        return pl.BlockSpec(a.shape, lambda b, _nd=nd: (0,) * _nd)

    in_specs = [
        pl.BlockSpec((None, S, D), lambda b: (b, 0, 0)),   # x    -> kernel [S, D]
        pl.BlockSpec((None, 1, S), lambda b: (b, 0, 0)),   # mask -> kernel [1, S]
    ] + [full_spec(a) for a in operands[2:]]

    kernel = functools.partial(encoder_layer_kernel, num_heads=H, head_dim=dk)

    return pl.pallas_call(
        kernel,
        out_shape=jax.ShapeDtypeStruct((B, S, D), x.dtype),
        grid=(B,),
        in_specs=in_specs,
        out_specs=pl.BlockSpec((None, S, D), lambda b: (b, 0, 0)),
        compiler_params=pltpu.CompilerParams(
            dimension_semantics=("parallel",),
            vmem_limit_bytes=32 * 1024 * 1024),
    )(*operands)


def ref_forward(x, mask, p, *, num_heads):
    """Pure-JAX reference (same math incl. bf16 matmul operands) for checking."""
    cd = jnp.bfloat16

    def ln(v, g, b):
        d = v.shape[-1]
        mean = jnp.mean(v, axis=-1, keepdims=True)
        var = jnp.sum((v - mean) ** 2, axis=-1, keepdims=True) / (d - 1)
        return g * (v - mean) / (jnp.sqrt(var) + EPS) + b

    H, D, dk = p["wq"].shape
    xn = ln(x, p["g1"][0], p["be1"][0])
    acc = jnp.zeros_like(x)
    for h in range(H):
        q = jnp.einsum("bsd,dk->bsk", xn.astype(cd), p["wq"][h].astype(cd),
                       preferred_element_type=jnp.float32) + p["bq"][h]
        k = jnp.einsum("bsd,dk->bsk", xn.astype(cd), p["wk"][h].astype(cd),
                       preferred_element_type=jnp.float32) + p["bk"][h]
        v = jnp.einsum("bsd,dk->bsk", xn.astype(cd), p["wv"][h].astype(cd),
                       preferred_element_type=jnp.float32) + p["bv"][h]
        s = jnp.einsum("bqd,bkd->bqk", q.astype(cd), k.astype(cd),
                       preferred_element_type=jnp.float32) / math.sqrt(dk)
        s = jnp.where(mask == 0, NEG_INF, s)
        pw = jax.nn.softmax(s, axis=-1)
        oh = jnp.einsum("bqk,bkd->bqd", pw.astype(cd), v.astype(cd),
                        preferred_element_type=jnp.float32)
        acc = acc + jnp.einsum("bqd,dm->bqm", oh.astype(cd), p["wo"][h].astype(cd),
                               preferred_element_type=jnp.float32)
    x1 = x + acc + p["bo"][0]
    xn2 = ln(x1, p["g2"][0], p["be2"][0])
    h1 = jnp.maximum(
        jnp.einsum("bsd,df->bsf", xn2.astype(cd), p["w1"].astype(cd),
                   preferred_element_type=jnp.float32) + p["b1"][0], 0.0)
    ff = jnp.einsum("bsf,fd->bsd", h1.astype(cd), p["w2"].astype(cd),
                    preferred_element_type=jnp.float32) + p["b2"][0]
    return x1 + ff


def init_params(key, D, H, F):
    dk = D // H
    ks = jax.random.split(key, 8)
    sc = 0.1
    return {
        "wq": sc * jax.random.normal(ks[0], (H, D, dk), jnp.float32),
        "bq": sc * jax.random.normal(ks[1], (H, 1, dk), jnp.float32),
        "wk": sc * jax.random.normal(ks[2], (H, D, dk), jnp.float32),
        "bk": jnp.zeros((H, 1, dk), jnp.float32),
        "wv": sc * jax.random.normal(ks[3], (H, D, dk), jnp.float32),
        "bv": jnp.zeros((H, 1, dk), jnp.float32),
        "wo": sc * jax.random.normal(ks[4], (H, dk, D), jnp.float32),
        "bo": sc * jax.random.normal(ks[5], (1, D), jnp.float32),
        "g1": jnp.ones((1, D), jnp.float32),
        "be1": jnp.zeros((1, D), jnp.float32),
        "g2": jnp.ones((1, D), jnp.float32),
        "be2": jnp.zeros((1, D), jnp.float32),
        "w1": sc * jax.random.normal(ks[6], (D, F), jnp.float32),
        "b1": jnp.zeros((1, F), jnp.float32),
        "w2": sc * jax.random.normal(ks[7], (F, D), jnp.float32),
        "b2": jnp.zeros((1, D), jnp.float32),
    }


if __name__ == "__main__":
    B, S, D, H, F = 2, 8, 32, 4, 64
    key = jax.random.PRNGKey(0)
    kx, kp = jax.random.split(key)
    x = jax.random.normal(kx, (B, S, D), jnp.float32)
    # mask: batch 0 attends to all positions; batch 1 masks the last 2 positions
    mask = jnp.ones((B, 1, S), jnp.int32)
    mask = mask.at[1, 0, S - 2:].set(0)
    params = init_params(kp, D, H, F)

    out = encoder_layer(x, mask, params, num_heads=H)
    out = jax.block_until_ready(out)

    ref = ref_forward(x, mask, params, num_heads=H)
    assert out.shape == (B, S, D)
    assert bool(jnp.all(jnp.isfinite(out)))
    # bf16 matmul operands + approx reciprocal => tolerance wider than pure f32
    assert bool(jnp.allclose(out, ref, atol=2e-2, rtol=2e-2)), "mismatch vs JAX reference"
    print("KERNEL_OK")
</pallas_src>

<mosaic_0001>
module attributes {stable_mosaic.version = 11 : i64} {
  func.func @encoder_layer_kernel(%arg0: i32, %arg1: memref<1x8x32xf32, #tpu.memory_space<vmem>>, %arg2: memref<1x1x8xi32, #tpu.memory_space<vmem>>, %arg3: memref<32x96xbf16, #tpu.memory_space<vmem>>, %arg4: memref<1x96xf32, #tpu.memory_space<vmem>>, %arg5: memref<32x32xbf16, #tpu.memory_space<vmem>>, %arg6: memref<1x32xf32, #tpu.memory_space<vmem>>, %arg7: memref<1x32xf32, #tpu.memory_space<vmem>>, %arg8: memref<1x32xf32, #tpu.memory_space<vmem>>, %arg9: memref<1x32xf32, #tpu.memory_space<vmem>>, %arg10: memref<1x32xf32, #tpu.memory_space<vmem>>, %arg11: memref<32x64xbf16, #tpu.memory_space<vmem>>, %arg12: memref<1x64xf32, #tpu.memory_space<vmem>>, %arg13: memref<64x32xbf16, #tpu.memory_space<vmem>>, %arg14: memref<1x32xf32, #tpu.memory_space<vmem>>, %arg15: memref<1x8x32xf32, #tpu.memory_space<vmem>>) attributes {dimension_semantics = [#tpu.dimension_semantics<parallel>], iteration_bounds = array<i64: 2>, scalar_prefetch = 0 : i64, scratch_operands = 0 : i64, tpu.core_type = #tpu.core_type<tc>, window_params = [{transform_indices = @transform_0, window_bounds = array<i64: 1, 8, 32>}, {transform_indices = @transform_1, window_bounds = array<i64: 1, 1, 8>}, {pipeline_mode = #tpu.pipeline_mode<synchronous>, transform_indices = @transform_2, window_bounds = array<i64: 32, 96>}, {pipeline_mode = #tpu.pipeline_mode<synchronous>, transform_indices = @transform_3, window_bounds = array<i64: 1, 96>}, {pipeline_mode = #tpu.pipeline_mode<synchronous>, transform_indices = @transform_4, window_bounds = array<i64: 32, 32>}, {pipeline_mode = #tpu.pipeline_mode<synchronous>, transform_indices = @transform_5, window_bounds = array<i64: 1, 32>}, {pipeline_mode = #tpu.pipeline_mode<synchronous>, transform_indices = @transform_6, window_bounds = array<i64: 1, 32>}, {pipeline_mode = #tpu.pipeline_mode<synchronous>, transform_indices = @transform_7, window_bounds = array<i64: 1, 32>}, {pipeline_mode = #tpu.pipeline_mode<synchronous>, transform_indices = @transform_8, window_bounds = array<i64: 1, 32>}, {pipeline_mode = #tpu.pipeline_mode<synchronous>, transform_indices = @transform_9, window_bounds = array<i64: 1, 32>}, {pipeline_mode = #tpu.pipeline_mode<synchronous>, transform_indices = @transform_10, window_bounds = array<i64: 32, 64>}, {pipeline_mode = #tpu.pipeline_mode<synchronous>, transform_indices = @transform_11, window_bounds = array<i64: 1, 64>}, {pipeline_mode = #tpu.pipeline_mode<synchronous>, transform_indices = @transform_12, window_bounds = array<i64: 64, 32>}, {pipeline_mode = #tpu.pipeline_mode<synchronous>, transform_indices = @transform_13, window_bounds = array<i64: 1, 32>}, {transform_indices = @transform_14, window_bounds = array<i64: 1, 8, 32>}]} {
    %c0 = arith.constant 0 : index
    %c0_0 = arith.constant 0 : index
    %c0_1 = arith.constant 0 : index
    %0 = vector.load %arg1[%c0, %c0_0, %c0_1] : memref<1x8x32xf32, #tpu.memory_space<vmem>>, vector<1x8x32xf32>
    %1 = vector.shape_cast %0 : vector<1x8x32xf32> to vector<8x32xf32>
    %c0_2 = arith.constant 0 : index
    %c0_3 = arith.constant 0 : index
    %c0_4 = arith.constant 0 : index
    %2 = vector.load %arg2[%c0_2, %c0_3, %c0_4] : memref<1x1x8xi32, #tpu.memory_space<vmem>>, vector<1x1x8xi32>
    %3 = vector.shape_cast %2 : vector<1x1x8xi32> to vector<1x8xi32>
    %c0_i32 = arith.constant 0 : i32
    %4 = vector.broadcast %c0_i32 : i32 to vector<1x8xi32>
    %5 = arith.cmpi eq, %3, %4 : vector<1x8xi32>
    %cst = arith.constant -1.000000e+09 : f32
    %cst_5 = arith.constant 0.000000e+00 : f32
    %6 = vector.broadcast %cst : f32 to vector<1x8xf32>
    %7 = vector.broadcast %cst_5 : f32 to vector<1x8xf32>
    %8 = arith.select %5, %6, %7 : vector<1x8xi1>, vector<1x8xf32>
    %9 = vector.shape_cast %8 : vector<1x8xf32> to vector<1x8xf32>
    %10 = vector.broadcast %9 : vector<1x8xf32> to vector<8x8xf32>
    %c0_6 = arith.constant 0 : index
    %c0_7 = arith.constant 0 : index
    %11 = vector.load %arg7[%c0_6, %c0_7] : memref<1x32xf32, #tpu.memory_space<vmem>>, vector<1x32xf32>
    %c0_8 = arith.constant 0 : index
    %c0_9 = arith.constant 0 : index
    %12 = vector.load %arg8[%c0_8, %c0_9] : memref<1x32xf32, #tpu.memory_space<vmem>>, vector<1x32xf32>
    %cst_10 = arith.constant dense<0.000000e+00> : vector<8xf32>
    %13 = vector.multi_reduction <add>, %1, %cst_10 [1] : vector<8x32xf32> to vector<8xf32>
    %14 = vector.shape_cast %13 : vector<8xf32> to vector<8x1xf32>
    %cst_11 = arith.constant 3.200000e+01 : f32
    %15 = vector.broadcast %cst_11 : f32 to vector<8x1xf32>
    %16 = arith.divf %14, %15 : vector<8x1xf32>
    %17 = vector.broadcast %16 : vector<8x1xf32> to vector<8x32xf32>
    %18 = arith.subf %1, %17 : vector<8x32xf32>
    %19 = arith.mulf %18, %18 : vector<8x32xf32>
    %cst_12 = arith.constant dense<0.000000e+00> : vector<8xf32>
    %20 = vector.multi_reduction <add>, %19, %cst_12 [1] : vector<8x32xf32> to vector<8xf32>
    %21 = vector.shape_cast %20 : vector<8xf32> to vector<8x1xf32>
    %cst_13 = arith.constant 3.100000e+01 : f32
    %22 = vector.broadcast %cst_13 : f32 to vector<8x1xf32>
    %23 = arith.divf %21, %22 : vector<8x1xf32>
    %24 = math.sqrt %23 : vector<8x1xf32>
    %25 = vector.broadcast %16 : vector<8x1xf32> to vector<8x32xf32>
    %26 = arith.subf %1, %25 : vector<8x32xf32>
    %27 = vector.broadcast %11 : vector<1x32xf32> to vector<8x32xf32>
    %28 = arith.mulf %27, %26 : vector<8x32xf32>
    %cst_14 = arith.constant 9.99999997E-7 : f32
    %29 = vector.broadcast %cst_14 : f32 to vector<8x1xf32>
    %30 = arith.addf %24, %29 : vector<8x1xf32>
    %31 = vector.broadcast %30 : vector<8x1xf32> to vector<8x32xf32>
    %32 = arith.divf %28, %31 : vector<8x32xf32>
    %33 = vector.broadcast %12 : vector<1x32xf32> to vector<8x32xf32>
    %34 = arith.addf %32, %33 : vector<8x32xf32>
    %35 = arith.truncf %34 : vector<8x32xf32> to vector<8x32xbf16>
    %c0_15 = arith.constant 0 : index
    %c0_16 = arith.constant 0 : index
    %36 = vector.load %arg3[%c0_15, %c0_16] : memref<32x96xbf16, #tpu.memory_space<vmem>>, vector<32x96xbf16>
    %cst_17 = arith.constant dense<0.000000e+00> : vector<8x96xf32>
    %37 = tpu.matmul %35, %36, %cst_17 {dimension_numbers = #tpu.dot_dimension_numbers<[1], [0], [0], [1], [0, 0, 1, 1], [], []>} : vector<8x32xbf16>, vector<32x96xbf16>, vector<8x96xf32> -> vector<8x96xf32>
    %c0_18 = arith.constant 0 : index
    %c0_19 = arith.constant 0 : index
    %38 = vector.load %arg4[%c0_18, %c0_19] : memref<1x96xf32, #tpu.memory_space<vmem>>, vector<1x96xf32>
    %39 = vector.broadcast %38 : vector<1x96xf32> to vector<8x96xf32>
    %40 = arith.addf %37, %39 : vector<8x96xf32>
    %41 = vector.extract_strided_slice %40 {offsets = [0, 0], sizes = [8, 32], strides = [1, 1]} : vector<8x96xf32> to vector<8x32xf32>
    %cst_20 = arith.constant 0.353553385 : f32
    %42 = vector.broadcast %cst_20 : f32 to vector<8x32xf32>
    %43 = arith.mulf %41, %42 : vector<8x32xf32>
    %44 = arith.truncf %43 : vector<8x32xf32> to vector<8x32xbf16>
    %45 = vector.extract_strided_slice %40 {offsets = [0, 32], sizes = [8, 32], strides = [1, 1]} : vector<8x96xf32> to vector<8x32xf32>
    %46 = arith.truncf %45 : vector<8x32xf32> to vector<8x32xbf16>
    %47 = vector.extract_strided_slice %40 {offsets = [0, 64], sizes = [8, 32], strides = [1, 1]} : vector<8x96xf32> to vector<8x32xf32>
    %48 = arith.truncf %47 : vector<8x32xf32> to vector<8x32xbf16>
    %49 = vector.extract_strided_slice %44 {offsets = [0, 0], sizes = [8, 8], strides = [1, 1]} : vector<8x32xbf16> to vector<8x8xbf16>
    %50 = vector.extract_strided_slice %46 {offsets = [0, 0], sizes = [8, 8], strides = [1, 1]} : vector<8x32xbf16> to vector<8x8xbf16>
    %51 = vector.extract_strided_slice %48 {offsets = [0, 0], sizes = [8, 8], strides = [1, 1]} : vector<8x32xbf16> to vector<8x8xbf16>
    %52 = tpu.transpose %50, [1, 0] : vector<8x8xbf16> -> vector<8x8xbf16>
    %cst_21 = arith.constant dense<0.000000e+00> : vector<8x8xf32>
    %53 = tpu.matmul %49, %52, %cst_21 {dimension_numbers = #tpu.dot_dimension_numbers<[1], [0], [0], [1], [0, 0, 1, 1], [], []>} : vector<8x8xbf16>, vector<8x8xbf16>, vector<8x8xf32> -> vector<8x8xf32>
    %54 = arith.addf %53, %10 : vector<8x8xf32>
    %cst_22 = arith.constant dense<0xFF800000> : vector<8xf32>
    %55 = vector.multi_reduction <maximumf>, %54, %cst_22 [1] : vector<8x8xf32> to vector<8xf32>
    %56 = vector.shape_cast %55 : vector<8xf32> to vector<8x1xf32>
    %57 = vector.broadcast %56 : vector<8x1xf32> to vector<8x8xf32>
    %58 = arith.subf %54, %57 : vector<8x8xf32>
    %59 = math.exp %58 : vector<8x8xf32>
    %cst_23 = arith.constant dense<0.000000e+00> : vector<8xf32>
    %60 = vector.multi_reduction <add>, %59, %cst_23 [1] : vector<8x8xf32> to vector<8xf32>
    %61 = vector.shape_cast %60 : vector<8xf32> to vector<8x1xf32>
    %62 = arith.truncf %59 : vector<8x8xf32> to vector<8x8xbf16>
    %cst_24 = arith.constant dense<0.000000e+00> : vector<8x8xf32>
    %63 = tpu.matmul %62, %51, %cst_24 {dimension_numbers = #tpu.dot_dimension_numbers<[1], [0], [0], [1], [0, 0, 1, 1], [], []>} : vector<8x8xbf16>, vector<8x8xbf16>, vector<8x8xf32> -> vector<8x8xf32>
    %64 = tpu.reciprocal %61 {approx = true} : vector<8x1xf32> -> vector<8x1xf32>
    %65 = vector.broadcast %64 : vector<8x1xf32> to vector<8x8xf32>
    %66 = arith.mulf %63, %65 : vector<8x8xf32>
    %67 = vector.extract_strided_slice %44 {offsets = [0, 8], sizes = [8, 8], strides = [1, 1]} : vector<8x32xbf16> to vector<8x8xbf16>
    %68 = vector.extract_strided_slice %46 {offsets = [0, 8], sizes = [8, 8], strides = [1, 1]} : vector<8x32xbf16> to vector<8x8xbf16>
    %69 = vector.extract_strided_slice %48 {offsets = [0, 8], sizes = [8, 8], strides = [1, 1]} : vector<8x32xbf16> to vector<8x8xbf16>
    %70 = tpu.transpose %68, [1, 0] : vector<8x8xbf16> -> vector<8x8xbf16>
    %cst_25 = arith.constant dense<0.000000e+00> : vector<8x8xf32>
    %71 = tpu.matmul %67, %70, %cst_25 {dimension_numbers = #tpu.dot_dimension_numbers<[1], [0], [0], [1], [0, 0, 1, 1], [], []>} : vector<8x8xbf16>, vector<8x8xbf16>, vector<8x8xf32> -> vector<8x8xf32>
    %72 = arith.addf %71, %10 : vector<8x8xf32>
    %cst_26 = arith.constant dense<0xFF800000> : vector<8xf32>
    %73 = vector.multi_reduction <maximumf>, %72, %cst_26 [1] : vector<8x8xf32> to vector<8xf32>
    %74 = vector.shape_cast %73 : vector<8xf32> to vector<8x1xf32>
    %75 = vector.broadcast %74 : vector<8x1xf32> to vector<8x8xf32>
    %76 = arith.subf %72, %75 : vector<8x8xf32>
    %77 = math.exp %76 : vector<8x8xf32>
    %cst_27 = arith.constant dense<0.000000e+00> : vector<8xf32>
    %78 = vector.multi_reduction <add>, %77, %cst_27 [1] : vector<8x8xf32> to vector<8xf32>
    %79 = vector.shape_cast %78 : vector<8xf32> to vector<8x1xf32>
    %80 = arith.truncf %77 : vector<8x8xf32> to vector<8x8xbf16>
    %cst_28 = arith.constant dense<0.000000e+00> : vector<8x8xf32>
    %81 = tpu.matmul %80, %69, %cst_28 {dimension_numbers = #tpu.dot_dimension_numbers<[1], [0], [0], [1], [0, 0, 1, 1], [], []>} : vector<8x8xbf16>, vector<8x8xbf16>, vector<8x8xf32> -> vector<8x8xf32>
    %82 = tpu.reciprocal %79 {approx = true} : vector<8x1xf32> -> vector<8x1xf32>
    %83 = vector.broadcast %82 : vector<8x1xf32> to vector<8x8xf32>
    %84 = arith.mulf %81, %83 : vector<8x8xf32>
    %85 = vector.extract_strided_slice %44 {offsets = [0, 16], sizes = [8, 8], strides = [1, 1]} : vector<8x32xbf16> to vector<8x8xbf16>
    %86 = vector.extract_strided_slice %46 {offsets = [0, 16], sizes = [8, 8], strides = [1, 1]} : vector<8x32xbf16> to vector<8x8xbf16>
    %87 = vector.extract_strided_slice %48 {offsets = [0, 16], sizes = [8, 8], strides = [1, 1]} : vector<8x32xbf16> to vector<8x8xbf16>
    %88 = tpu.transpose %86, [1, 0] : vector<8x8xbf16> -> vector<8x8xbf16>
    %cst_29 = arith.constant dense<0.000000e+00> : vector<8x8xf32>
    %89 = tpu.matmul %85, %88, %cst_29 {dimension_numbers = #tpu.dot_dimension_numbers<[1], [0], [0], [1], [0, 0, 1, 1], [], []>} : vector<8x8xbf16>, vector<8x8xbf16>, vector<8x8xf32> -> vector<8x8xf32>
    %90 = arith.addf %89, %10 : vector<8x8xf32>
    %cst_30 = arith.constant dense<0xFF800000> : vector<8xf32>
    %91 = vector.multi_reduction <maximumf>, %90, %cst_30 [1] : vector<8x8xf32> to vector<8xf32>
    %92 = vector.shape_cast %91 : vector<8xf32> to vector<8x1xf32>
    %93 = vector.broadcast %92 : vector<8x1xf32> to vector<8x8xf32>
    %94 = arith.subf %90, %93 : vector<8x8xf32>
    %95 = math.exp %94 : vector<8x8xf32>
    %cst_31 = arith.constant dense<0.000000e+00> : vector<8xf32>
    %96 = vector.multi_reduction <add>, %95, %cst_31 [1] : vector<8x8xf32> to vector<8xf32>
    %97 = vector.shape_cast %96 : vector<8xf32> to vector<8x1xf32>
    %98 = arith.truncf %95 : vector<8x8xf32> to vector<8x8xbf16>
    %cst_32 = arith.constant dense<0.000000e+00> : vector<8x8xf32>
    %99 = tpu.matmul %98, %87, %cst_32 {dimension_numbers = #tpu.dot_dimension_numbers<[1], [0], [0], [1], [0, 0, 1, 1], [], []>} : vector<8x8xbf16>, vector<8x8xbf16>, vector<8x8xf32> -> vector<8x8xf32>
    %100 = tpu.reciprocal %97 {approx = true} : vector<8x1xf32> -> vector<8x1xf32>
    %101 = vector.broadcast %100 : vector<8x1xf32> to vector<8x8xf32>
    %102 = arith.mulf %99, %101 : vector<8x8xf32>
    %103 = vector.extract_strided_slice %44 {offsets = [0, 24], sizes = [8, 8], strides = [1, 1]} : vector<8x32xbf16> to vector<8x8xbf16>
    %104 = vector.extract_strided_slice %46 {offsets = [0, 24], sizes = [8, 8], strides = [1, 1]} : vector<8x32xbf16> to vector<8x8xbf16>
    %105 = vector.extract_strided_slice %48 {offsets = [0, 24], sizes = [8, 8], strides = [1, 1]} : vector<8x32xbf16> to vector<8x8xbf16>
    %106 = tpu.transpose %104, [1, 0] : vector<8x8xbf16> -> vector<8x8xbf16>
    %cst_33 = arith.constant dense<0.000000e+00> : vector<8x8xf32>
    %107 = tpu.matmul %103, %106, %cst_33 {dimension_numbers = #tpu.dot_dimension_numbers<[1], [0], [0], [1], [0, 0, 1, 1], [], []>} : vector<8x8xbf16>, vector<8x8xbf16>, vector<8x8xf32> -> vector<8x8xf32>
    %108 = arith.addf %107, %10 : vector<8x8xf32>
    %cst_34 = arith.constant dense<0xFF800000> : vector<8xf32>
    %109 = vector.multi_reduction <maximumf>, %108, %cst_34 [1] : vector<8x8xf32> to vector<8xf32>
    %110 = vector.shape_cast %109 : vector<8xf32> to vector<8x1xf32>
    %111 = vector.broadcast %110 : vector<8x1xf32> to vector<8x8xf32>
    %112 = arith.subf %108, %111 : vector<8x8xf32>
    %113 = math.exp %112 : vector<8x8xf32>
    %cst_35 = arith.constant dense<0.000000e+00> : vector<8xf32>
    %114 = vector.multi_reduction <add>, %113, %cst_35 [1] : vector<8x8xf32> to vector<8xf32>
    %115 = vector.shape_cast %114 : vector<8xf32> to vector<8x1xf32>
    %116 = arith.truncf %113 : vector<8x8xf32> to vector<8x8xbf16>
    %cst_36 = arith.constant dense<0.000000e+00> : vector<8x8xf32>
    %117 = tpu.matmul %116, %105, %cst_36 {dimension_numbers = #tpu.dot_dimension_numbers<[1], [0], [0], [1], [0, 0, 1, 1], [], []>} : vector<8x8xbf16>, vector<8x8xbf16>, vector<8x8xf32> -> vector<8x8xf32>
    %118 = tpu.reciprocal %115 {approx = true} : vector<8x1xf32> -> vector<8x1xf32>
    %119 = vector.broadcast %118 : vector<8x1xf32> to vector<8x8xf32>
    %120 = arith.mulf %117, %119 : vector<8x8xf32>
    %121 = tpu.concatenate %66, %84, %102, %120 in 1 : vector<8x8xf32>, vector<8x8xf32>, vector<8x8xf32>, vector<8x8xf32> -> vector<8x32xf32>
    %122 = arith.truncf %121 : vector<8x32xf32> to vector<8x32xbf16>
    %c0_37 = arith.constant 0 : index
    %c0_38 = arith.constant 0 : index
    %123 = vector.load %arg5[%c0_37, %c0_38] : memref<32x32xbf16, #tpu.memory_space<vmem>>, vector<32x32xbf16>
    %cst_39 = arith.constant dense<0.000000e+00> : vector<8x32xf32>
    %124 = tpu.matmul %122, %123, %cst_39 {dimension_numbers = #tpu.dot_dimension_numbers<[1], [0], [0], [1], [0, 0, 1, 1], [], []>} : vector<8x32xbf16>, vector<32x32xbf16>, vector<8x32xf32> -> vector<8x32xf32>
    %c0_40 = arith.constant 0 : index
    %c0_41 = arith.constant 0 : index
    %125 = vector.load %arg6[%c0_40, %c0_41] : memref<1x32xf32, #tpu.memory_space<vmem>>, vector<1x32xf32>
    %126 = vector.broadcast %125 : vector<1x32xf32> to vector<8x32xf32>
    %127 = arith.addf %124, %126 : vector<8x32xf32>
    %128 = arith.addf %1, %127 : vector<8x32xf32>
    %c0_42 = arith.constant 0 : index
    %c0_43 = arith.constant 0 : index
    %129 = vector.load %arg9[%c0_42, %c0_43] : memref<1x32xf32, #tpu.memory_space<vmem>>, vector<1x32xf32>
    %c0_44 = arith.constant 0 : index
    %c0_45 = arith.constant 0 : index
    %130 = vector.load %arg10[%c0_44, %c0_45] : memref<1x32xf32, #tpu.memory_space<vmem>>, vector<1x32xf32>
    %cst_46 = arith.constant dense<0.000000e+00> : vector<8xf32>
    %131 = vector.multi_reduction <add>, %128, %cst_46 [1] : vector<8x32xf32> to vector<8xf32>
    %132 = vector.shape_cast %131 : vector<8xf32> to vector<8x1xf32>
    %cst_47 = arith.constant 3.200000e+01 : f32
    %133 = vector.broadcast %cst_47 : f32 to vector<8x1xf32>
    %134 = arith.divf %132, %133 : vector<8x1xf32>
    %135 = vector.broadcast %134 : vector<8x1xf32> to vector<8x32xf32>
    %136 = arith.subf %128, %135 : vector<8x32xf32>
    %137 = arith.mulf %136, %136 : vector<8x32xf32>
    %cst_48 = arith.constant dense<0.000000e+00> : vector<8xf32>
    %138 = vector.multi_reduction <add>, %137, %cst_48 [1] : vector<8x32xf32> to vector<8xf32>
    %139 = vector.shape_cast %138 : vector<8xf32> to vector<8x1xf32>
    %cst_49 = arith.constant 3.100000e+01 : f32
    %140 = vector.broadcast %cst_49 : f32 to vector<8x1xf32>
    %141 = arith.divf %139, %140 : vector<8x1xf32>
    %142 = math.sqrt %141 : vector<8x1xf32>
    %143 = vector.broadcast %134 : vector<8x1xf32> to vector<8x32xf32>
    %144 = arith.subf %128, %143 : vector<8x32xf32>
    %145 = vector.broadcast %129 : vector<1x32xf32> to vector<8x32xf32>
    %146 = arith.mulf %145, %144 : vector<8x32xf32>
    %cst_50 = arith.constant 9.99999997E-7 : f32
    %147 = vector.broadcast %cst_50 : f32 to vector<8x1xf32>
    %148 = arith.addf %142, %147 : vector<8x1xf32>
    %149 = vector.broadcast %148 : vector<8x1xf32> to vector<8x32xf32>
    %150 = arith.divf %146, %149 : vector<8x32xf32>
    %151 = vector.broadcast %130 : vector<1x32xf32> to vector<8x32xf32>
    %152 = arith.addf %150, %151 : vector<8x32xf32>
    %153 = arith.truncf %152 : vector<8x32xf32> to vector<8x32xbf16>
    %c0_51 = arith.constant 0 : index
    %c0_52 = arith.constant 0 : index
    %154 = vector.load %arg11[%c0_51, %c0_52] : memref<32x64xbf16, #tpu.memory_space<vmem>>, vector<32x64xbf16>
    %cst_53 = arith.constant dense<0.000000e+00> : vector<8x64xf32>
    %155 = tpu.matmul %153, %154, %cst_53 {dimension_numbers = #tpu.dot_dimension_numbers<[1], [0], [0], [1], [0, 0, 1, 1], [], []>} : vector<8x32xbf16>, vector<32x64xbf16>, vector<8x64xf32> -> vector<8x64xf32>
    %c0_54 = arith.constant 0 : index
    %c0_55 = arith.constant 0 : index
    %156 = vector.load %arg12[%c0_54, %c0_55] : memref<1x64xf32, #tpu.memory_space<vmem>>, vector<1x64xf32>
    %157 = vector.broadcast %156 : vector<1x64xf32> to vector<8x64xf32>
    %158 = arith.addf %155, %157 : vector<8x64xf32>
    %cst_56 = arith.constant 0.000000e+00 : f32
    %159 = vector.broadcast %cst_56 : f32 to vector<8x64xf32>
    %160 = arith.maximumf %158, %159 : vector<8x64xf32>
    %161 = arith.truncf %160 : vector<8x64xf32> to vector<8x64xbf16>
    %c0_57 = arith.constant 0 : index
    %c0_58 = arith.constant 0 : index
    %162 = vector.load %arg13[%c0_57, %c0_58] : memref<64x32xbf16, #tpu.memory_space<vmem>>, vector<64x32xbf16>
    %cst_59 = arith.constant dense<0.000000e+00> : vector<8x32xf32>
    %163 = tpu.matmul %161, %162, %cst_59 {dimension_numbers = #tpu.dot_dimension_numbers<[1], [0], [0], [1], [0, 0, 1, 1], [], []>} : vector<8x64xbf16>, vector<64x32xbf16>, vector<8x32xf32> -> vector<8x32xf32>
    %c0_60 = arith.constant 0 : index
    %c0_61 = arith.constant 0 : index
    %164 = vector.load %arg14[%c0_60, %c0_61] : memref<1x32xf32, #tpu.memory_space<vmem>>, vector<1x32xf32>
    %165 = vector.broadcast %164 : vector<1x32xf32> to vector<8x32xf32>
    %166 = arith.addf %163, %165 : vector<8x32xf32>
    %167 = arith.addf %128, %166 : vector<8x32xf32>
    %c0_62 = arith.constant 0 : index
    %c0_63 = arith.constant 0 : index
    %c0_64 = arith.constant 0 : index
    %168 = vector.load %arg15[%c0_62, %c0_63, %c0_64] : memref<1x8x32xf32, #tpu.memory_space<vmem>>, vector<1x8x32xf32>
    %169 = vector.shape_cast %168 : vector<1x8x32xf32> to vector<8x32xf32>
    %170 = vector.shape_cast %167 : vector<8x32xf32> to vector<1x8x32xf32>
    tpu.vector_store %arg15[%c0_62, %c0_63, %c0_64], %170 {strides = array<i32>} : memref<1x8x32xf32, #tpu.memory_space<vmem>>, vector<1x8x32xf32>,
    return
  }
  func.func @transform_0(%arg0: i32) -> (i32, i32, i32) {
    %c0_i32 = arith.constant 0 : i32
    %c0_i32_0 = arith.constant 0 : i32
    %c0_i32_1 = arith.constant 0 : i32
    return %arg0, %c0_i32, %c0_i32_0 : i32, i32, i32
  }
  func.func @transform_1(%arg0: i32) -> (i32, i32, i32) {
    %c0_i32 = arith.constant 0 : i32
    %c0_i32_0 = arith.constant 0 : i32
    %c0_i32_1 = arith.constant 0 : i32
    return %arg0, %c0_i32, %c0_i32_0 : i32, i32, i32
  }
  func.func @transform_2(%arg0: i32) -> (i32, i32) {
    %c0_i32 = arith.constant 0 : i32
    %c0_i32_0 = arith.constant 0 : i32
    %c0_i32_1 = arith.constant 0 : i32
    return %c0_i32, %c0_i32_0 : i32, i32
  }
  func.func @transform_3(%arg0: i32) -> (i32, i32) {
    %c0_i32 = arith.constant 0 : i32
    %c0_i32_0 = arith.constant 0 : i32
    %c0_i32_1 = arith.constant 0 : i32
    return %c0_i32, %c0_i32_0 : i32, i32
  }
  func.func @transform_4(%arg0: i32) -> (i32, i32) {
    %c0_i32 = arith.constant 0 : i32
    %c0_i32_0 = arith.constant 0 : i32
    %c0_i32_1 = arith.constant 0 : i32
    return %c0_i32, %c0_i32_0 : i32, i32
  }
  func.func @transform_5(%arg0: i32) -> (i32, i32) {
    %c0_i32 = arith.constant 0 : i32
    %c0_i32_0 = arith.constant 0 : i32
    %c0_i32_1 = arith.constant 0 : i32
    return %c0_i32, %c0_i32_0 : i32, i32
  }
  func.func @transform_6(%arg0: i32) -> (i32, i32) {
    %c0_i32 = arith.constant 0 : i32
    %c0_i32_0 = arith.constant 0 : i32
    %c0_i32_1 = arith.constant 0 : i32
    return %c0_i32, %c0_i32_0 : i32, i32
  }
  func.func @transform_7(%arg0: i32) -> (i32, i32) {
    %c0_i32 = arith.constant 0 : i32
    %c0_i32_0 = arith.constant 0 : i32
    %c0_i32_1 = arith.constant 0 : i32
    return %c0_i32, %c0_i32_0 : i32, i32
  }
  func.func @transform_8(%arg0: i32) -> (i32, i32) {
    %c0_i32 = arith.constant 0 : i32
    %c0_i32_0 = arith.constant 0 : i32
    %c0_i32_1 = arith.constant 0 : i32
    return %c0_i32, %c0_i32_0 : i32, i32
  }
  func.func @transform_9(%arg0: i32) -> (i32, i32) {
    %c0_i32 = arith.constant 0 : i32
    %c0_i32_0 = arith.constant 0 : i32
    %c0_i32_1 = arith.constant 0 : i32
    return %c0_i32, %c0_i32_0 : i32, i32
  }
  func.func @transform_10(%arg0: i32) -> (i32, i32) {
    %c0_i32 = arith.constant 0 : i32
    %c0_i32_0 = arith.constant 0 : i32
    %c0_i32_1 = arith.constant 0 : i32
    return %c0_i32, %c0_i32_0 : i32, i32
  }
  func.func @transform_11(%arg0: i32) -> (i32, i32) {
    %c0_i32 = arith.constant 0 : i32
    %c0_i32_0 = arith.constant 0 : i32
    %c0_i32_1 = arith.constant 0 : i32
    return %c0_i32, %c0_i32_0 : i32, i32
  }
  func.func @transform_12(%arg0: i32) -> (i32, i32) {
    %c0_i32 = arith.constant 0 : i32
    %c0_i32_0 = arith.constant 0 : i32
    %c0_i32_1 = arith.constant 0 : i32
    return %c0_i32, %c0_i32_0 : i32, i32
  }
  func.func @transform_13(%arg0: i32) -> (i32, i32) {
    %c0_i32 = arith.constant 0 : i32
    %c0_i32_0 = arith.constant 0 : i32
    %c0_i32_1 = arith.constant 0 : i32
    return %c0_i32, %c0_i32_0 : i32, i32
  }
  func.func @transform_14(%arg0: i32) -> (i32, i32, i32) {
    %c0_i32 = arith.constant 0 : i32
    %c0_i32_0 = arith.constant 0 : i32
    %c0_i32_1 = arith.constant 0 : i32
    return %arg0, %c0_i32, %c0_i32_0 : i32, i32, i32
  }
}

</mosaic_0001>

<bundles_post_ra>
// kernel: tpu_custom_call.1
= control target key start
LH: loop header
LB: loop body
LE: loop exit
PB: predicated region body
PF: predicated region fallthrough
CT: control target
= control target key end

     0   :  { %s2622_s0 = inlined_call_operand.vmem [shape: f32[2,8,32], index: 0, kind: input, shape index: {}]   ;;  %s2623_s1 = inlined_call_operand.hbm [shape: s32[2,1,8], index: 1, kind: input, shape index: {}]   ;;  %s2624_s2 = inlined_call_operand.vmem [shape: bf16[32,96], index: 2, kind: input, shape index: {}]   ;;  %s2625_s3 = inlined_call_operand.hbm [shape: f32[1,96], index: 3, kind: input, shape index: {}]   ;;  %s2626_s4 = inlined_call_operand.vmem [shape: bf16[32,32], index: 4, kind: input, shape index: {}]   ;;  %s2627_s5 = inlined_call_operand.hbm [shape: f32[1,32], index: 5, kind: input, shape index: {}]   ;;  %s2628_s6 = inlined_call_operand.hbm [shape: f32[1,32], index: 6, kind: input, shape index: {}]   ;;  %s2629_s7 = inlined_call_operand.hbm [shape: f32[1,32], index: 7, kind: input, shape index: {}]   ;;  %s2630_s8 = inlined_call_operand.hbm [shape: f32[1,32], index: 8, kind: input, shape index: {}]   ;;  %s2631_s9 = inlined_call_operand.hbm [shape: f32[1,32], index: 9, kind: input, shape index: {}]   ;;  %s2632_s10 = inlined_call_operand.vmem [shape: bf16[32,64], index: 10, kind: input, shape index: {}]   ;;  %s2633_s11 = inlined_call_operand.vmem [shape: f32[1,64], index: 11, kind: input, shape index: {}]   ;;  %s2634_s12 = inlined_call_operand.vmem [shape: bf16[64,32], index: 12, kind: input, shape index: {}]   ;;  %s2635_s13 = inlined_call_operand.vmem [shape: f32[1,32], index: 13, kind: input, shape index: {}]   ;;  %s2636_s14 = inlined_call_operand.hbm [shape: f32[2,8,32], index: 14, kind: output, shape index: {}]  }
   0x1   :  { %2643 = sst [smem:[#allocation22_spill]] %s2625_s3 }
   0x2   :  { %2644 = sst [smem:[#allocation23_spill]] %s2627_s5 }
   0x3   :  { %2645 = sst [smem:[#allocation24_spill]] %s2628_s6 }
   0x4   :  { %2646 = sst [smem:[#allocation25_spill]] %s2629_s7 }
   0x5   :  { %2647 = sst [smem:[#allocation26_spill]] %s2630_s8 }
   0x6   :  { %2648 = sst [smem:[#allocation27_spill]] %s2631_s9 }
   0x7   :  { %2649 = sst [smem:[#allocation28_spill]] %s2636_s14 }
   0x8   :  { %19 = vsyncpa [#allocation3], 0 }
   0x9   :  { %21 = vsyncpa [#allocation3 + $0x1], 0 }
   0xa   :  { %22 = vsyncpa [#allocation6], 0 }
   0xb   :  { %23 = vsyncpa [#allocation9], 0 }
   0xc   :  { %24 = vsyncpa [#allocation12], 0 }
   0xd   :  { %25 = vsyncpa [#allocation4], 0 }
   0xe   :  { %27 = vsyncpa [#allocation4 + $0x1], 0  ;;  %s2244_s29 = smov 0   ;;  %s2246_s30 = smov 0  }
   0xf   :  { %s2248_s15 = smov 0   ;;  %s2250_s16 = smov 0  }
  0x10 LB: > { %2650 = sst [smem:[#allocation20_spill]] %s2139_s15  ;;  %s2145_s17 = smov [#allocation5]   ;;  %s2143_s16 = sphi %s2250_s16, %s2683_s16   ;;  %s2139_s15 = sphi %s2248_s15, %s2680_s15   ;;  %s2135_s30 = sphi %s2246_s30, %s2682_s30   ;;  %s2131_s29 = sphi %s2244_s29, %s2681_s29  }
  0x11   : > { %s384_s18 = sshll.u32 %s2145_s17, 4  ;;  %s2265_s19 = sadd.s32 4294967295, %s2143_s16   ;;  %s385_s18 = int_to_ptr.vmem [resolvable:$true] %s384_s18 }
  0x12   : > { %p1560_p0 = scmp.ge.s32.totalorder %s2143_s16, 1  ;;  %p2638_p1 = scmp.eq.s32.totalorder %s2265_s19, 0 }
  0x13   : > { %p368_p2 = scmp.lt.s32.totalorder %s2143_s16, 3  ;;  %s2146_s21 = smov [#allocation8]  }
  0x14   : > { %s409_s22 = sshll.u32 %s2146_s21, 4  ;;  %s2147_s23 = smov [#allocation11]   ;;  %s2277_s22 = int_to_ptr.vmem [resolvable:$true] %s409_s22 }
  0x15   : > { %p2270_p3 = pnand %p1560_p0, %p368_p2  ;;  %s431_s24 = sshll.u32 %s2147_s23, 4  ;;  %s2285_s24 = int_to_ptr.vmem [resolvable:$true] %s431_s24 }
  0x16   : > { %s2148_s26 = smov [#allocation7]   ;;  %s1894_s17 = scalar_lea.vmem %s385_s18, 16 }
  0x17   : > { %s2651_s20 = scalar_select %p2270_p3, 1, 0 }
  0x18   : > { %p1754_p5 = pneg %p2270_p3  ;;  %s2287_s27 = sshll.u32 %s2148_s26, 4  ;;  %s399_s27 = int_to_ptr.vmem [resolvable:$true] %s2287_s27 }
  0x19   : > { %p1895_p8 = scmp.ne.s32.totalorder %s385_s18, %s1894_s17  ;;  %s1901_s21 = scalar_lea.vmem %s385_s18, 32 }
  0x1a   : > { %p2281_p6 = pnand %p1754_p5, %p2638_p1  ;;  %p1902_p11 = scmp.lt.s32.totalorder %s385_s18, %s385_s18 }
  0x1b   : > { %p1903_p12 = scmp.lt.s32.totalorder %s1901_s21, %s1894_s17 }
  0x1c   : > { %p2291_p7 = pneg %p2281_p6 }
  0x1d   : > { %p1904_p13 = por %p1903_p12, %p1902_p11 }
  0x1e   : > { %p1897_p9 = pnand %p1895_p8, %p2291_p7 }
  0x20   : > { %p1898_p10 = pneg %p1897_p9 }
  0x22   : > { %p1905_p0 = pnand %p1904_p13, %p1898_p10 }
  0x24   : > { %1908 = shalt.err (!%p1905_p0)
}
  0x25   : > { %s2654_s3 = sld [smem:[#allocation22_spill]]  ;;  %s1920_s14 = scalar_lea.vmem %s2277_s22, 16 }
  0x26   : > { %p1921_p2 = scmp.ne.s32.totalorder %s2277_s22, %s1920_s14  ;;  %s1927_s17 = scalar_lea.vmem %s2277_s22, 32 }
  0x27   : > { %p1928_p9 = scmp.lt.s32.totalorder %s2277_s22, %s2277_s22  ;;  %p1929_p10 = scmp.lt.s32.totalorder %s1927_s17, %s1920_s14 }
  0x28   : > { %p1923_p5 = pnand %p1921_p2, %p2291_p7 }
  0x29   : > { %p1930_p11 = por %p1929_p10, %p1928_p9 }
  0x2a   : > { %p1924_p8 = pneg %p1923_p5 }
  0x2b   : > { %1757 = dma.hbm_to_vmem [thread:$0]  (!%p2281_p6), %s2654_s3, 16, %s385_s18, [#allocation6]  }
  0x2c   : > { %p1931_p12 = pnand %p1930_p11, %p1924_p8 }
  0x2e   : > { %1934 = shalt.err (!%p1931_p12)
}
  0x2f   : > { %s2655_s6 = sld [smem:[#allocation24_spill]]  ;;  %s1946_s18 = scalar_lea.vmem %s2285_s24, 16 }
  0x30   : > { %p1947_p13 = scmp.ne.s32.totalorder %s2285_s24, %s1946_s18  ;;  %s1953_s14 = scalar_lea.vmem %s2285_s24, 32 }
  0x31   : > { %p1954_p5 = scmp.lt.s32.totalorder %s2285_s24, %s2285_s24  ;;  %p1955_p8 = scmp.lt.s32.totalorder %s1953_s14, %s1946_s18 }
  0x32   : > { %p1949_p0 = pnand %p1947_p13, %p2291_p7 }
  0x33   : > { %p1956_p9 = por %p1955_p8, %p1954_p5 }
  0x34   : > { %p1950_p2 = pneg %p1949_p0 }
  0x35   : > { %1763 = dma.hbm_to_vmem [thread:$0]  (!%p2281_p6), %s2655_s6, 16, %s2277_s22, [#allocation9]  }
  0x36   : > { %p1957_p10 = pnand %p1956_p9, %p1950_p2 }
  0x38   : > { %1960 = shalt.err (!%p1957_p10)
}
  0x39   : > { %s2656_s8 = sld [smem:[#allocation26_spill]]  ;;  %s2149_s22 = smov [#allocation10]  }
  0x3a   : > { %s420_s21 = sshll.u32 %s2149_s22, 4  ;;  %s1972_s23 = scalar_lea.vmem %s399_s27, 16  ;;  %s421_s21 = int_to_ptr.vmem [resolvable:$true] %s420_s21 }
  0x3b   : > { %p1973_p11 = scmp.ne.s32.totalorder %s399_s27, %s1972_s23  ;;  %s1979_s18 = scalar_lea.vmem %s399_s27, 32 }
  0x3c   : > { %p1980_p0 = scmp.lt.s32.totalorder %s399_s27, %s399_s27  ;;  %p1981_p2 = scmp.lt.s32.totalorder %s1979_s18, %s1972_s23 }
  0x3d   : > { %p1975_p12 = pnand %p1973_p11, %p2291_p7 }
  0x3e   : > { %p1982_p5 = por %p1981_p2, %p1980_p0 }
  0x3f   : > { %1769 = dma.hbm_to_vmem [thread:$0]  (!%p2281_p6), %s2656_s8, 16, %s2285_s24, [#allocation12]  }
  0x40   : > { %p1976_p13 = pneg %p1975_p12 }
  0x42   : > { %p1983_p8 = pnand %p1982_p5, %p1976_p13 }
  0x44   : > { %1986 = shalt.err (!%p1983_p8)
}
  0x45   : > { %s2657_s5 = sld [smem:[#allocation23_spill]]  ;;  %s1998_s24 = scalar_lea.vmem %s421_s21, 16 }
  0x46   : > { %p1999_p9 = scmp.ne.s32.totalorder %s421_s21, %s1998_s24  ;;  %s2005_s17 = scalar_lea.vmem %s421_s21, 32 }
  0x47   : > { %p2006_p12 = scmp.lt.s32.totalorder %s421_s21, %s421_s21  ;;  %p2007_p4 = scmp.lt.s32.totalorder %s2005_s17, %s1998_s24 }
  0x48   : > { %p2001_p10 = pnand %p1999_p9, %p2291_p7 }
  0x49   : > { %p2008_p1 = por %p2007_p4, %p2006_p12 }
  0x4a   : > { %p2002_p11 = pneg %p2001_p10 }
  0x4b   : > { %1760 = dma.hbm_to_vmem [thread:$0]  (!%p2281_p6), %s2657_s5, 16, %s399_s27, [#allocation6]  }
  0x4c   : > { %p2009_p0 = pnand %p2008_p1, %p2002_p11 }
  0x4e   : > { %2012 = shalt.err (!%p2009_p0)
}
  0x4f   : > { %s2658_s7 = sld [smem:[#allocation25_spill]]  ;;  %s2150_s27 = smov [#allocation13]  }
  0x50   : > { %s442_s18 = sshll.u32 %s2150_s27, 4  ;;  %s443_s18 = int_to_ptr.vmem [resolvable:$true] %s442_s18 }
  0x51   : > { %s2024_s14 = scalar_lea.vmem %s443_s18, 16  ;;  %s2031_s26 = scalar_lea.vmem %s443_s18, 32 }
  0x52   : > { %p2025_p13 = scmp.ne.s32.totalorder %s443_s18, %s2024_s14  ;;  %p2032_p8 = scmp.lt.s32.totalorder %s443_s18, %s443_s18 }
  0x53   : > { %p2033_p4 = scmp.lt.s32.totalorder %s2031_s26, %s2024_s14 }
  0x54   : > { %p2027_p2 = pnand %p2025_p13, %p2291_p7 }
  0x55   : > { %1766 = dma.hbm_to_vmem [thread:$0]  (!%p2281_p6), %s2658_s7, 16, %s421_s21, [#allocation9]  }
  0x56   : > { %p2028_p5 = pneg %p2027_p2  ;;  %p2034_p1 = por %p2033_p4, %p2032_p8 }
  0x58   : > { %p2035_p9 = pnand %p2034_p1, %p2028_p5 }
  0x5a   : > { %2038 = shalt.err (!%p2035_p9)
}
  0x5b   : > { %s2659_s9 = sld [smem:[#allocation27_spill]]  ;;  %s1559_s28 = sadd.s32 4294967294, %s2143_s16  }
  0x5c   : > { %s2352_s25 = sadd.s32 1, %s2143_s16   ;;  %s66_s22 = sadd.s32 1, %s2139_s15 }
  0x5d   : > { %s63_s21 = ssub.s32 %s2143_s16, %s2352_s25  ;;  %p73_p10 = scmp.ne.s32.totalorder %s2139_s15, %s2135_s30 }
  0x5e   : > { %p64_p7 = scmp.eq.s32.totalorder %s63_s21, 0  ;;  %p74_p11 = scmp.eq.s32.totalorder %s2143_s16, 0 }
  0x5f   : > { %p79_p12 = scmp.ne.s32.totalorder %s2135_s30, %s2131_s29  ;;  %p2662_p13 = scmp.eq.s32.totalorder %s2265_s19, 0 }
  0x60   : > { %s2363_s23 = scalar_select %p64_p7, %s2139_s15, %s66_s22  }
  0x61   : > { %1772 = dma.hbm_to_vmem [thread:$0]  (!%p2281_p6), %s2659_s9, 16, %s443_s18, [#allocation12]  }
  0x62   : > { %2660 = sst [smem:[#allocation21_spill]] %s2363_s23  ;;  %p2365_p0 = por %p74_p11, %p73_p10 }
  0x63   : > { %p2371_p6 = por %p2662_p13, %p79_p12  ;;  %p355_p2 = scmp.eq.s32.totalorder %s2265_s19, 1 }
  0x64   : > { %p361_p5 = scmp.eq.s32.totalorder %s1559_s28, 1  ;;  %p1787_p8 = scmp.lt.s32.totalorder %s2143_s16, 2 }
  0x65   : > { %s2663_s18 = scalar_select %p2371_p6, 1, 0 }
  0x66   : > { %s472_s14 = sand.u32 1, %s2139_s15   ;;  %p2378_p4 = por %p355_p2, %p73_p10 }
  0x67   : > { %p2382_p1 = por %p361_p5, %p79_p12  ;;  %s1568_s17 = sshll.u32 %s2143_s16, 4 }
  0x68   : > { %s2664_s26 = scalar_select %p2378_p4, 1, 0 }
  0x69   : > { %s2665_s24 = scalar_select %p2382_p1, 1, 0 }
  0x6a   : > { %s475_s21 = scalar_lea.vmem [#allocation2], %s472_s14  ;;  %s2390_s6 = scalar_lea.hbm %s2623_s1, %s1568_s17 }
  0x6b   : > { %s482_s22 = sshll.u32 %s475_s21, 4  ;;  %p2394_p9 = pnand %p1787_p8, %p2365_p0  ;;  %s483_s22 = int_to_ptr.vmem [resolvable:$true] %s482_s22 }
  0x6c   : > { %s473_s7 = scalar_lea.sflag [#allocation3], %s472_s14  ;;  %s2039_s8 = scalar_lea.hbm %s2390_s6, 16 }
  0x6d   : > { %p2040_p7 = scmp.ne.s32.totalorder %s2390_s6, %s2039_s8  ;;  %p2041_p10 = pneg %p2394_p9 }
  0x6e   : > { %s2044_s17 = scalar_lea.hbm %s2623_s1, 32  ;;  %p2045_p13 = scmp.lt.s32.totalorder %s2390_s6, %s2623_s1 }
  0x6f   : > { %p2042_p11 = pnand %p2041_p10, %p2040_p7  ;;  %p2046_p0 = scmp.lt.s32.totalorder %s2044_s17, %s2039_s8 }
  0x71   : > { %p2043_p12 = pneg %p2042_p11  ;;  %p2047_p2 = por %p2046_p0, %p2045_p13 }
  0x73   : > { %p2048_p5 = pnand %p2047_p2, %p2043_p12 }
  0x75   : > { %2051 = shalt.err (!%p2048_p5)
}
  0x76   : > { %s2052_s27 = scalar_lea.vmem %s483_s22, 16  ;;  %s2151_s14 = smov [#allocation2]  }
  0x77   : > { %p2053_p8 = scmp.ne.s32.totalorder %s483_s22, %s2052_s27  ;;  %s2057_s23 = sshll.u32 %s2151_s14, 4  ;;  %s2058_s23 = int_to_ptr.vmem [resolvable:$false] %s2057_s23 }
  0x78   : > { %s2059_s15 = scalar_lea.vmem %s2058_s23, 32  ;;  %p2060_p7 = scmp.lt.s32.totalorder %s483_s22, %s2058_s23 }
  0x79   : > { %p2055_p1 = pnand %p2053_p8, %p2041_p10  ;;  %p2061_p11 = scmp.lt.s32.totalorder %s2059_s15, %s2052_s27 }
  0x7b   : > { %p2056_p4 = pneg %p2055_p1  ;;  %p2062_p6 = por %p2061_p11, %p2060_p7 }
  0x7d   : > { %p2063_p3 = pnand %p2062_p6, %p2056_p4 }
  0x7f   : > { %2066 = shalt.err (!%p2063_p3)
}
  0x80   : > { %1776 = dma.hbm_to_vmem [thread:$0]  (!%p2394_p9), %s2390_s6, 16, %s483_s22, %s473_s7  }
  0x81   : > { %p2667_p12 = scmp.ne.s32.totalorder %s2651_s20, 0 }
  0x82   : > { %s2415_s8 = sand.u32 (!%p2667_p12), 1, %s2135_s30   ;;  %p2668_p1 = scmp.ne.s32.totalorder (!%p2667_p12), %s2663_s18, 0 }
  0x83   : > { %491 = sbr.rel (%p2667_p12) target bundleno = 2460 (0x99c), region = 76  ;;  %s494_s9 = scalar_lea.sflag (!%p2667_p12), [#allocation3], %s2415_s8 }
  0x84   : > { %s496_s3 = scalar_lea.vmem (!%p2667_p12), [#allocation2], %s2415_s8 }
  0x88   : > { %2110 = dma.done.wait (%p2668_p1), %s494_s9, 16  }
  0x89   : > { %2112 = vsyncadd (%p2668_p1), %s494_s9, 4294967280  ;;  %p2669_p3 = scmp.eq.s32.totalorder %s2265_s19, 0 }
  0x8b   : > { %2114 = dma.done.wait (%p2669_p3), [#allocation6], 32   ;;  %p2670_p6 = pmov %p2669_p3 }
  0x8c   : > { %p2671_p4 = pmov %p2669_p3 }
  0x8d   : > { %2116 = vsyncadd (%p2670_p6), [#allocation6], 4294967264 }
  0x8e   : > { %2118 = dma.done.wait (%p2671_p4), [#allocation9], 32   ;;  %p2672_p9 = pmov %p2669_p3 }
  0x8f   : > { %p2673_p10 = pmov %p2669_p3 }
  0x90   : > { %2120 = vsyncadd (%p2672_p9), [#allocation9], 4294967264 }
  0x91   : > { %2122 = dma.done.wait (%p2673_p10), [#allocation12], 32   ;;  %p2674_p13 = pmov %p2669_p3 }
  0x92   : > { %p568_p0 = scmp.lt.s32.totalorder %s2265_s19, 1  ;;  %vm585_vm0 = vcmask 261120   ;;  %v1849_v7 = vld [vmem:[%s2624_s2 + $0x8] sm:$0xff]   ;;  %v2152_v8 = vmov 0.0   ;;  %vm2153_vm1 = vmmov 0   ;;  %v1850_v9 = vld [vmem:[%s2624_s2] sm:$0xff]   ;;  %v578_v45 = vlaneseq }
  0x93   : > { %2124 = vsyncadd (%p2674_p13), [#allocation12], 4294967264  ;;  %1642 = vmatprep.subr.bf16.mxu0 %v2152_v8  ;;  %1646 = vmatprep.mubr.msk.bf16.mxu0 %vm2153_vm1, %v2152_v8  ;;  %v1578_v18 = vld [vmem:[#allocation8] ss:$0 sm:$0xff]  ;;  %v1579_v21 = vld [vmem:[#allocation10] ss:$0 sm:$0xff] }
  0x94   : > { %s569_s6 = scalar_select %p568_p0, %s2265_s19, 1  ;;  %1643 = vmatpush3.bf16.msra.mxu0 %v1849_v7  ;;  %1650 = vmatprep.subr.bf16.mxu1 %v2152_v8  ;;  %v1580_v25 = vld [vmem:[#allocation5] ss:$0 sm:$0xff]  ;;  %vm695_vm4 = vcmask 64512   ;;  %v574_v46 = vld [vmem:[%s496_s3] sm:$0x1] }
  0x95   : > { %1644 = vmatprep.subr.bf16.mxu0 %v2152_v8  ;;  %1652 = vmatprep.mubr.msk.bf16.mxu1 %vm2153_vm1, %v2152_v8  ;;  %s2154_s17 = smov 96   ;;  %s2155_s21 = smov 120   ;;  %v579_v47 = vshrl.u32 %v578_v45, 7  ;;  %vm575_vm5 = vcmp.eq.s32.totalorder %v574_v46, 0  ;;  %vm757_vm6 = vcmask 1043456   ;;  %vm1147_vm7 = vcmask 130048  }
  0x96   : > { %s1577_s7 = sshll.u32 %s569_s6, 3  ;;  %s2156_s27 = smov 88   ;;  %v576_v49 = vsel %vm575_vm5, -1e+09, %v2152_v8  ;;  %vm1149_vm8 = vcmask 195584   ;;  %vm1363_vm11 = vcmask 523264  }
  0x97   : > { %s571_s23 = scalar_lea.vmem %s2622_s0, %s1577_s7  ;;  %s2157_s14 = smov 80   ;;  %v580_v48 = vsub.s32 0, %v579_v47 }
  0x98   : > { %v2440_v0 = vld [vmem:[%s571_s23] sm:$0xff]  ;;  %1645 = vmatpush3.bf16.msra.mxu0 %v1850_v9  ;;  %s2158_s9 = smov 112   ;;  %s2159_s6 = smov 72  }
  0x99   : > { %v586_v1 = vsel %vm585_vm0, %v2440_v0, 0.0  ;;  %1656 = vmatprep.subr.bf16.mxu0 %v2152_v8  ;;  %s2160_s7 = smov 104   ;;  %v581_v50 = vrot.slane %v576_v49, %v580_v48  ;;  %s2161_s3 = smov 64  }
  0x9a   : > { %587 = vadd.xlane.f32.xlu0 %v586_v1  ;;  %s2162_s15 = smov 56   ;;  %s2163_s20 = smov 48  }
  0x9b   : > { %s2164_s23 = smov 40   ;;  %s2165_s18 = smov 8  }
  0x9c   : > { %p2676_p5 = scmp.ne.s32.totalorder %s2664_s26, 0  ;;  %s2168_s28 = smov [#allocation14]  }
  0x9d   : > { %s2071_s5 = sshll.u32 %s2168_s28, 4  ;;  %s2072_s5 = int_to_ptr.vmem [resolvable:$false] %s2071_s5 }
 0x123   : > { %v588_v2 = vpop.xlane.xlu0 %587 }
 0x124   : > { %v590_v3 = vmul.f32 0.03125, %v588_v2 }
 0x126   : > { %v591_v4 = vsub.f32 %v2440_v0, %v590_v3 }
 0x128   : > { %v592_v5 = vmul.f32 %v591_v4, %v591_v4  ;;  %v611_v19 = vmul.f32 %v1578_v18, %v591_v4 }
 0x12a   : > { %v593_v6 = vsel %vm585_vm0, %v592_v5, 0.0 }
 0x12b   : > { %594 = vadd.xlane.f32.xlu0 %v593_v6 }
 0x1b4   : > { %v595_v10 = vpop.xlane.xlu0 %594 }
 0x1b5   : > { %v597_v11 = vmul.f32 0.032258064, %v595_v10 }
 0x1b7   : > { %1859 = vrsqrt.f32 %v597_v11  ;;  %vm600_vm2 = vcmp.eq.f32.partialorder %v597_v11, inf  ;;  %v603_v14 = vand.u32 2147483648, %v597_v11  ;;  %vm602_vm3 = vcmp.eq.f32.partialorder %v597_v11, 0.0 }
 0x1c4   : > { %v1860_v12 = vpop.eup %1859 }
 0x1c5   : > { %v599_v13 = vmul.f32 %v1860_v12, %v597_v11 }
 0x1c7   : > { %v601_v15 = vsel %vm600_vm2, %v597_v11, %v599_v13 }
 0x1c8   : > { %v604_v16 = vsel %vm602_vm3, %v603_v14, %v601_v15 }
 0x1c9   : > { %v612_v17 = vadd.f32 1e-06, %v604_v16 }
 0x1cb   : > { %1861 = vrcp.f32 %v612_v17 }
 0x1d8   : > { %v1862_v20 = vpop.eup %1861 }
 0x1d9   : > { %v614_v22 = vmul.f32 %v1862_v20, %v611_v19 }
 0x1db   : > { %v621_v23 = vadd.f32 %v1579_v21, %v614_v22 }
 0x1dd   : > { %v622_v24 = vpack.c.bf16 %v621_v23, %v621_v23 }
 0x1df   : > { %1647 = vmatmul.mubr.msk.bf16.vlgmr.msra.gmra.mxu0 %vm585_vm0, %v622_v24 }
 0x1e0   : > { %1658 = vmatprep.mubr.msk.bf16.mxu0 %vm2153_vm1, %v2152_v8 }
 0x29f   : > { %v683_v26 = vpop.f32.mrf.mxu0 }
 0x2a0   : > { %v684_v27 = vadd.f32 %v1580_v25, %v683_v26 }
 0x2a1   : > { %v1648_v28 = vpop.f32.mrf.mxu0 }
 0x2a2   : > { %v689_v29 = vmul.f32 0.35355338, %v684_v27  ;;  %v2463_v30 = vpack.c.bf16 %v684_v27, %v684_v27 }
 0x2a3   : > { %v686_v31 = vpop.f32.mrf.mxu0 }
 0x2a4   : > { %v690_v32 = vpack.c.bf16 %v689_v29, %v689_v29  ;;  %693 = vrot.lane.b32.xlu1 %v2463_v30, %s2154_s17  ;;  %s2073_s17 = scalar_lea.vmem %s2072_s5, 256 }
 0x2a5   : > { %v1649_v33 = vpop.f32.mrf.mxu0 }
 0x2a6   : > { %804 = vrot.lane.b32.xlu0 %v690_v32, %s2155_s21  ;;  %s2166_s21 = smov 16  }
 0x2a8   : > { %806 = vrot.lane.b32.xlu1 %v2463_v30, %s2156_s27  ;;  %s2167_s27 = smov 24  }
 0x2ac   : > { %916 = vrot.lane.b32.xlu1 %v2463_v30, %s2157_s14 }
 0x2b0   : > { %914 = vrot.lane.b32.xlu1 %v690_v32, %s2158_s9 }
 0x2b4   : > { %1026 = vrot.lane.b32.xlu1 %v2463_v30, %s2159_s6  ;;  %s1609_s6 = sshll.u32 %s2265_s19, 7  ;;  %s1410_s19 = scalar_lea.sflag [#allocation4], %s2415_s8 }
 0x2b8   : > { %1024 = vrot.lane.b32.xlu1 %v690_v32, %s2160_s7 }
 0x316   : > { %v694_v34 = vpop.permute.xlu1 %693 }
 0x317   : > { %v700_v35 = vsel %vm695_vm4, %v694_v34, 0 }
 0x318   : > { %1651 = vmatpush3.bf16.xpose.msra.mxu1 %v700_v35  ;;  %v805_v39 = vpop.permute.xlu0 %804 }
 0x319   : > { %1662 = vmatprep.subr.bf16.mxu1 %v2152_v8 }
 0x31a   : > { %v807_v36 = vpop.permute.xlu1 %806 }
 0x31b   : > { %v812_v37 = vsel %vm695_vm4, %v807_v36, 0 }
 0x31e   : > { %v917_v38 = vpop.permute.xlu1 %916 }
 0x31f   : > { %1653 = vmatmul.mubr.msk.bf16.vlgmr.msra.gmra.mxu1 %vm695_vm4, %v690_v32  ;;  %v922_v41 = vsel %vm695_vm4, %v917_v38, 0 }
 0x320   : > { %1663 = vmatpush3.bf16.xpose.msra.mxu1 %v812_v37  ;;  %1664 = vmatprep.mubr.msk.bf16.mxu1 %vm2153_vm1, %v2152_v8 }
 0x321   : > { %1674 = vmatprep.subr.bf16.mxu1 %v2152_v8 }
 0x322   : > { %v915_v40 = vpop.permute.xlu1 %914 }
 0x326   : > { %v1027_v42 = vpop.permute.xlu1 %1026 }
 0x327   : > { %1665 = vmatmul.mubr.msk.bf16.vlgmr.msra.gmra.mxu1 %vm695_vm4, %v805_v39  ;;  %v1032_v43 = vsel %vm695_vm4, %v1027_v42, 0 }
 0x328   : > { %1675 = vmatpush3.bf16.xpose.msra.mxu1 %v922_v41  ;;  %1676 = vmatprep.mubr.msk.bf16.mxu1 %vm2153_vm1, %v2152_v8 }
 0x329   : > { %1686 = vmatprep.subr.bf16.mxu1 %v2152_v8 }
 0x32a   : > { %v1025_v44 = vpop.permute.xlu1 %1024 }
 0x32f   : > { %1677 = vmatmul.mubr.msk.bf16.vlgmr.msra.gmra.mxu1 %vm695_vm4, %v915_v40 }
 0x330   : > { %1687 = vmatpush3.bf16.xpose.msra.mxu1 %v1032_v43  ;;  %1688 = vmatprep.mubr.msk.bf16.mxu1 %vm2153_vm1, %v2152_v8 }
 0x331   : > { %1698 = vmatprep.subr.bf16.mxu1 %v2152_v8 }
 0x337   : > { %1689 = vmatmul.mubr.msk.bf16.vlgmr.msra.gmra.mxu1 %vm695_vm4, %v1025_v44 }
 0x338   : > { %1702 = vmatprep.mubr.msk.bf16.mxu1 %vm2153_vm1, %v2152_v8 }
 0x3df   : > { %v736_v51 = vpop.f32.mrf.mxu1 }
 0x3e0   : > { %v737_v52 = vadd.f32 %v736_v51, %v581_v50 }
 0x3e1   : > { %v1654_v53 = vpop.f32.mrf.mxu1 }
 0x3e2   : > { %v742_v54 = vsel %vm695_vm4, %v737_v52, -inf }
 0x3e3   : > { %743 = vmax.xlane.f32.xlu1 %v742_v54  ;;  %v739_v55 = vpop.f32.mrf.mxu1 }
 0x3e5   : > { %v1655_v56 = vpop.f32.mrf.mxu1 }
 0x3e7   : > { %v848_v57 = vpop.f32.mrf.mxu1 }
 0x3e8   : > { %v849_v58 = vadd.f32 %v848_v57, %v581_v50  ;;  %v1851_v57 = vld [vmem:[%s2626_s4 + $0x8] sm:$0xff]  }
 0x3e9   : > { %v1666_v59 = vpop.f32.mrf.mxu1  ;;  %1699 = vmatpush3.bf16.msra.mxu1 %v1851_v57 }
 0x3ea   : > { %v854_v60 = vsel %vm695_vm4, %v849_v58, -inf  ;;  %v1852_v59 = vld [vmem:[%s2626_s4] sm:$0xff]   ;;  %1700 = vmatprep.subr.bf16.mxu1 %v2152_v8 }
 0x3eb   : > { %855 = vmax.xlane.f32.xlu0 %v854_v60  ;;  %v851_v61 = vpop.f32.mrf.mxu1 }
 0x3ed   : > { %v1667_v62 = vpop.f32.mrf.mxu1  ;;  %1701 = vmatpush3.bf16.msra.mxu1 %v1852_v59 }
 0x3ee   : > { %1714 = vmatprep.subr.bf16.mxu1 %v2152_v8 }
 0x3ef   : > { %v958_v63 = vpop.f32.mrf.mxu1 }
 0x3f0   : > { %v959_v11 = vadd.f32 %v958_v63, %v581_v50 }
 0x3f1   : > { %v1678_v1 = vpop.f32.mrf.mxu1 }
 0x3f2   : > { %v964_v12 = vsel %vm695_vm4, %v959_v11, -inf }
 0x3f3   : > { %v961_v2 = vpop.f32.mrf.mxu1 }
 0x3f4   : > { %752 = vrot.lane.b32.xlu1 %v2463_v30, %s2161_s3 }
 0x3f5   : > { %v1679_v3 = vpop.f32.mrf.mxu1 }
 0x3f7   : > { %v1068_v4 = vpop.f32.mrf.mxu1 }
 0x3f8   : > { %v1069_v5 = vadd.f32 %v1068_v4, %v581_v50 }
 0x3f9   : > { %v1690_v6 = vpop.f32.mrf.mxu1 }
 0x3fa   : > { %v1074_v7 = vsel %vm695_vm4, %v1069_v5, -inf }
 0x3fb   : > { %1075 = vmax.xlane.f32.xlu0 %v1074_v7  ;;  %v1071_v9 = vpop.f32.mrf.mxu1 }
 0x3fd   : > { %v1691_v10 = vpop.f32.mrf.mxu1 }
 0x411   : > { %864 = vrot.lane.b32.xlu0 %v2463_v30, %s2162_s15 }
 0x418   : > { %965 = vmax.xlane.f32.xlu1 %v964_v12 }
 0x429   : > { %974 = vrot.lane.b32.xlu1 %v2463_v30, %s2163_s20 }
 0x42d   : > { %1084 = vrot.lane.b32.xlu1 %v2463_v30, %s2164_s23  ;;  %s2675_s23 = sld [smem:[#allocation28_spill]] }
 0x46c   : > { %v744_v13 = vpop.xlane.xlu1 %743 }
 0x46d   : > { %v745_v14 = vsub.f32 %v737_v52, %v744_v13 }
 0x46f   : > { %v746_v15 = vmul.f32 1.442695, %v745_v14 }
 0x470   : > { %v753_v16 = vpop.permute.xlu1 %752 }
 0x471   : > { %1863 = vpow2.f32 %v746_v15  ;;  %v759_v17 = vsel %vm757_vm6, %v753_v16, 0 }
 0x472   : > { %1657 = vmatpush3.bf16.msra.mxu0 %v759_v17 }
 0x473   : > { %1668 = vmatprep.subr.bf16.mxu0 %v2152_v8 }
 0x474   : > { %v856_v18 = vpop.xlane.xlu0 %855 }
 0x475   : > { %v857_v19 = vsub.f32 %v849_v58, %v856_v18 }
 0x477   : > { %v858_v20 = vmul.f32 1.442695, %v857_v19 }
 0x479   : > { %1865 = vpow2.f32 %v858_v20  ;;  %v1592_v20 = vld [vmem:[#allocation7] ss:$0 sm:$0xff] }
 0x47e   : > { %v1864_v21 = vpop.eup %1863 }
 0x47f   : > { %v751_v22 = vpack.c.bf16 %v1864_v21, %v1864_v21  ;;  %v748_v33 = vsel %vm695_vm4, %v1864_v21, 0.0 }
 0x481   : > { %1659 = vmatmul.mubr.msk.bf16.vlgmr.msra.gmra.mxu0 %vm695_vm4, %v751_v22 }
 0x482   : > { %1670 = vmatprep.mubr.msk.bf16.mxu0 %vm2153_vm1, %v2152_v8 }
 0x484   : > { %v1076_v23 = vpop.xlane.xlu0 %1075 }
 0x485   : > { %v1077_v24 = vsub.f32 %v1069_v5, %v1076_v23 }
 0x486   : > { %v1866_v25 = vpop.eup %1865 }
 0x487   : > { %v1078_v26 = vmul.f32 1.442695, %v1077_v24  ;;  %v860_v27 = vsel %vm695_vm4, %v1866_v25, 0.0  ;;  %v863_v30 = vpack.c.bf16 %v1866_v25, %v1866_v25 }
 0x488   : > { %861 = vadd.xlane.f32.xlu0 %v860_v27  ;;  %v865_v28 = vpop.permute.xlu0 %864 }
 0x489   : > { %1867 = vpow2.f32 %v1078_v26  ;;  %v870_v29 = vsel %vm757_vm6, %v865_v28, 0 }
 0x48a   : > { %1669 = vmatpush3.bf16.msra.mxu0 %v870_v29 }
 0x48b   : > { %1680 = vmatprep.subr.bf16.mxu0 %v2152_v8 }
 0x48d   : > { %1671 = vmatmul.mubr.msk.bf16.vlgmr.msra.gmra.mxu0 %vm695_vm4, %v863_v30 }
 0x48e   : > { %1682 = vmatprep.mubr.msk.bf16.mxu0 %vm2153_vm1, %v2152_v8 }
 0x496   : > { %v1868_v31 = vpop.eup %1867 }
 0x497   : > { %v1080_v32 = vsel %vm695_vm4, %v1868_v31, 0.0  ;;  %v1083_v44 = vpack.c.bf16 %v1868_v31, %v1868_v31 }
 0x498   : > { %1081 = vadd.xlane.f32.xlu0 %v1080_v32 }
 0x49c   : > { %749 = vadd.xlane.f32.xlu0 %v748_v33  ;;  %v1853_v33 = vld [vmem:[%s2632_s10 + $0x8] sm:$0xff]  }
 0x4a1   : > { %v966_v34 = vpop.xlane.xlu1 %965 }
 0x4a2   : > { %v967_v35 = vsub.f32 %v959_v11, %v966_v34  ;;  %v1855_v34 = vld [vmem:[%s2634_s12 + $0x18] sm:$0xff]  }
 0x4a4   : > { %v968_v36 = vmul.f32 1.442695, %v967_v35  ;;  %v1856_v35 = vld [vmem:[%s2634_s12 + $0x10] sm:$0xff]  }
 0x4a5   : > { %v975_v37 = vpop.permute.xlu1 %974 }
 0x4a6   : > { %1869 = vpow2.f32 %v968_v36  ;;  %v980_v38 = vsel %vm757_vm6, %v975_v37, 0 }
 0x4a7   : > { %1681 = vmatpush3.bf16.msra.mxu0 %v980_v38 }
 0x4a8   : > { %1692 = vmatprep.subr.bf16.mxu0 %v2152_v8 }
 0x4a9   : > { %v1085_v40 = vpop.permute.xlu1 %1084 }
 0x4aa   : > { %v1090_v43 = vsel %vm757_vm6, %v1085_v40, 0 }
 0x4b3   : > { %v1870_v39 = vpop.eup %1869 }
 0x4b4   : > { %v970_v41 = vsel %vm695_vm4, %v1870_v39, 0.0  ;;  %v973_v42 = vpack.c.bf16 %v1870_v39, %v1870_v39 }
 0x4b5   : > { %971 = vadd.xlane.f32.xlu1 %v970_v41 }
 0x4b6   : > { %1683 = vmatmul.mubr.msk.bf16.vlgmr.msra.gmra.mxu0 %vm695_vm4, %v973_v42 }
 0x4b7   : > { %1693 = vmatpush3.bf16.msra.mxu0 %v1090_v43  ;;  %1694 = vmatprep.mubr.msk.bf16.mxu0 %vm2153_vm1, %v2152_v8 }
 0x4b8   : > { %1706 = vmatprep.subr.bf16.mxu0 %v2152_v8 }
 0x4be   : > { %1695 = vmatmul.mubr.msk.bf16.vlgmr.msra.gmra.mxu0 %vm695_vm4, %v1083_v44  ;;  %v1596_v44 = vld [vmem:[#allocation11] ss:$0 sm:$0xff] }
 0x4bf   : > { %1710 = vmatprep.mubr.msk.bf16.mxu0 %vm2153_vm1, %v2152_v8  ;;  %1707 = vmatpush3.bf16.msra.mxu0 %v1853_v33 }
 0x4c0   : > { %1708 = vmatprep.subr.bf16.mxu0 %v2152_v8 }
 0x511   : > { %v862_v45 = vpop.xlane.xlu0 %861 }
 0x512   : > { %1871 = vrcp.f32 %v862_v45 }
 0x51f   : > { %v1872_v50 = vpop.eup %1871 }
 0x521   : > { %v1082_v58 = vpop.xlane.xlu0 %1081 }
 0x525   : > { %v750_v10 = vpop.xlane.xlu0 %749 }
 0x53e   : > { %v972_v56 = vpop.xlane.xlu1 %971 }
 0x53f   : > { %1873 = vrcp.f32 %v972_v56 }
 0x540   : > { %1875 = vrcp.f32 %v1082_v58 }
 0x541   : > { %v795_v46 = vpop.f32.mrf.mxu0  ;;  %1877 = vrcp.f32 %v750_v10 }
 0x543   : > { %v1660_v47 = vpop.f32.mrf.mxu0 }
 0x544   : > { %v1597_v47 = vld [vmem:[#allocation13] ss:$0 sm:$0xff] }
 0x545   : > { %v798_v48 = vpop.f32.mrf.mxu0 }
 0x547   : > { %v1661_v49 = vpop.f32.mrf.mxu0 }
 0x54c   : > { %v1874_v60 = vpop.eup %1873 }
 0x54d   : > { %v906_v51 = vpop.f32.mrf.mxu0  ;;  %v1876_v3 = vpop.eup %1875 }
 0x54e   : > { %v913_v52 = vmul.f32 %v1872_v50, %v906_v51  ;;  %v1878_v11 = vpop.eup %1877  ;;  %v1857_v51 = vld [vmem:[%s2634_s12 + $0x8] sm:$0xff]  }
 0x54f   : > { %v1672_v53 = vpop.f32.mrf.mxu0  ;;  %v802_v13 = vmul.f32 %v1878_v11, %v795_v46 }
 0x550   : > { %1135 = vrot.lane.b32.xlu1 %v913_v52, %s2165_s18  ;;  %v1858_v52 = vld [vmem:[%s2634_s12] sm:$0xff]   ;;  %s2578_s18 = scalar_lea.hbm %s2675_s23, %s1609_s6 }
 0x551   : > { %v909_v54 = vpop.f32.mrf.mxu0  ;;  %v1598_v53 = vld [vmem:[%s2633_s11] ss:$0 sm:$0xff] }
 0x553   : > { %v1673_v55 = vpop.f32.mrf.mxu0 }
 0x576   : > { %v1016_v61 = vpop.f32.mrf.mxu0 }
 0x577   : > { %v1023_v62 = vmul.f32 %v1874_v60, %v1016_v61 }
 0x578   : > { %v1684_v63 = vpop.f32.mrf.mxu0 }
 0x579   : > { %1139 = vrot.lane.b32.xlu0 %v1023_v62, %s2166_s21 }
 0x57a   : > { %v1019_v1 = vpop.f32.mrf.mxu0 }
 0x57c   : > { %v1685_v2 = vpop.f32.mrf.mxu0 }
 0x57e   : > { %v1126_v4 = vpop.f32.mrf.mxu0 }
 0x57f   : > { %v1133_v5 = vmul.f32 %v1876_v3, %v1126_v4 }
 0x580   : > { %v1696_v6 = vpop.f32.mrf.mxu0 }
 0x581   : > { %1143 = vrot.lane.b32.xlu1 %v1133_v5, %s2167_s27  ;;  %s1576_s27 = sshll.u32 %s2415_s8, 3 }
 0x582   : > { %v1129_v7 = vpop.f32.mrf.mxu0  ;;  %s567_s7 = scalar_lea.vmem [#allocation14], %s1576_s27 }
 0x583   : > { %s1423_s3 = sshll.u32 %s567_s7, 4  ;;  %s2580_s3 = int_to_ptr.vmem [resolvable:$true] %s1423_s3 }
 0x584   : > { %v1697_v9 = vpop.f32.mrf.mxu0  ;;  %s2067_s22 = scalar_lea.vmem %s2580_s3, 128  ;;  %p2074_p11 = scmp.lt.s32.totalorder %s2580_s3, %s2072_s5 }
 0x585   : > { %p2068_p2 = scmp.ne.s32.totalorder %s2580_s3, %s2067_s22  ;;  %p2075_p12 = scmp.lt.s32.totalorder %s2073_s17, %s2067_s22 }
 0x587   : > { %p2069_p8 = pnand %p2068_p2, %p2676_p5  ;;  %p2076_p1 = por %p2075_p12, %p2074_p11 }
 0x589   : > { %p2070_p7 = pneg %p2069_p8 }
 0x58b   : > { %p2077_p3 = pnand %p2076_p1, %p2070_p7 }
 0x5c2   : > { %v1136_v12 = vpop.permute.xlu1 %1135 }
 0x5c3   : > { %v1146_v15 = vsel %vm695_vm4, %v802_v13, %v1136_v12 }
 0x5eb   : > { %v1140_v14 = vpop.permute.xlu0 %1139 }
 0x5ec   : > { %v1148_v16 = vsel %vm1147_vm7, %v1146_v15, %v1140_v14 }
 0x5f3   : > { %v1144_v17 = vpop.permute.xlu1 %1143 }
 0x5f4   : > { %v1150_v18 = vsel %vm1149_vm8, %v1148_v16, %v1144_v17 }
 0x5f5   : > { %v1151_v19 = vpack.c.bf16 %v1150_v18, %v1150_v18 }
 0x5f7   : > { %1703 = vmatmul.mubr.msk.bf16.vlgmr.msra.gmra.mxu1 %vm585_vm0, %v1151_v19 }
 0x5f8   : > { %1722 = vmatprep.mubr.msk.bf16.mxu1 %vm2153_vm1, %v2152_v8  ;;  %1715 = vmatpush3.bf16.msra.mxu1 %v1855_v34 }
 0x5f9   : > { %1716 = vmatprep.subr.bf16.mxu1 %v2152_v8 }
 0x5fc   : > { %1717 = vmatpush3.bf16.msra.mxu1 %v1856_v35 }
 0x5fd   : > { %1718 = vmatprep.subr.bf16.mxu1 %v2152_v8 }
 0x600   : > { %1719 = vmatpush3.bf16.msra.mxu1 %v1857_v51 }
 0x601   : > { %1720 = vmatprep.subr.bf16.mxu1 %v2152_v8  ;;  %v1602_v8 = vld [vmem:[%s2635_s13] ss:$0 sm:$0xff] }
 0x604   : > { %1721 = vmatpush3.bf16.msra.mxu1 %v1858_v52 }
 0x6b7   : > { %v1212_v21 = vpop.f32.mrf.mxu1 }
 0x6b8   : > { %v1213_v22 = vadd.f32 %v1592_v20, %v1212_v21 }
 0x6b9   : > { %v1704_v23 = vpop.f32.mrf.mxu1 }
 0x6ba   : > { %v2537_v24 = vadd.f32 %v1213_v22, %v2440_v0  ;;  %v1854_v0 = vld [vmem:[%s2632_s10] sm:$0xff]  }
 0x6bb   : > { %v1215_v25 = vpop.f32.mrf.mxu1  ;;  %1709 = vmatpush3.bf16.msra.mxu0 %v1854_v0 }
 0x6bc   : > { %v1221_v26 = vsel %vm585_vm0, %v2537_v24, 0.0 }
 0x6bd   : > { %1222 = vadd.xlane.f32.xlu1 %v1221_v26  ;;  %v1705_v27 = vpop.f32.mrf.mxu1 }
 0x746   : > { %v1223_v28 = vpop.xlane.xlu1 %1222 }
 0x747   : > { %v1224_v29 = vmul.f32 0.03125, %v1223_v28 }
 0x749   : > { %v1225_v30 = vsub.f32 %v2537_v24, %v1224_v29 }
 0x74b   : > { %v1226_v31 = vmul.f32 %v1225_v30, %v1225_v30  ;;  %v1244_v45 = vmul.f32 %v1596_v44, %v1225_v30 }
 0x74d   : > { %v1227_v32 = vsel %vm585_vm0, %v1226_v31, 0.0 }
 0x74e   : > { %1228 = vadd.xlane.f32.xlu0 %v1227_v32 }
 0x7d7   : > { %v1229_v36 = vpop.xlane.xlu0 %1228 }
 0x7d8   : > { %v1230_v37 = vmul.f32 0.032258064, %v1229_v36 }
 0x7da   : > { %1879 = vrsqrt.f32 %v1230_v37  ;;  %vm1233_vm9 = vcmp.eq.f32.partialorder %v1230_v37, inf  ;;  %v1236_v40 = vand.u32 2147483648, %v1230_v37  ;;  %vm1235_vm10 = vcmp.eq.f32.partialorder %v1230_v37, 0.0 }
 0x7e7   : > { %v1880_v38 = vpop.eup %1879 }
 0x7e8   : > { %v1232_v39 = vmul.f32 %v1880_v38, %v1230_v37 }
 0x7ea   : > { %v1234_v41 = vsel %vm1233_vm9, %v1230_v37, %v1232_v39 }
 0x7eb   : > { %v1237_v42 = vsel %vm1235_vm10, %v1236_v40, %v1234_v41 }
 0x7ec   : > { %v1245_v43 = vadd.f32 1e-06, %v1237_v42 }
 0x7ee   : > { %1881 = vrcp.f32 %v1245_v43 }
 0x7fb   : > { %v1882_v46 = vpop.eup %1881 }
 0x7fc   : > { %v1247_v48 = vmul.f32 %v1882_v46, %v1244_v45 }
 0x7fe   : > { %v1254_v49 = vadd.f32 %v1597_v47, %v1247_v48 }
 0x800   : > { %v1255_v50 = vpack.c.bf16 %v1254_v49, %v1254_v49 }
 0x802   : > { %1711 = vmatmul.mubr.msk.bf16.vlgmr.msra.gmra.mxu0 %vm585_vm0, %v1255_v50 }
 0x8c2   : > { %v1316_v54 = vpop.f32.mrf.mxu0 }
 0x8c3   : > { %v1317_v55 = vadd.f32 %v1598_v53, %v1316_v54 }
 0x8c4   : > { %v1712_v56 = vpop.f32.mrf.mxu0 }
 0x8c5   : > { %v1322_v57 = vmax.f32 %v1317_v55, 0.0 }
 0x8c6   : > { %v1319_v58 = vpop.f32.mrf.mxu0 }
 0x8c7   : > { %v1323_v59 = vpack.c.bf16 %v1322_v57, %v1322_v57 }
 0x8c8   : > { %v1713_v60 = vpop.f32.mrf.mxu0 }
 0x8c9   : > { %1723 = vmatmul.mubr.msk.bf16.vlgmr.msra.gmra.mxu1 %vm1363_vm11, %v1323_v59 }
 0x989   : > { %v1401_v61 = vpop.f32.mrf.mxu1 }
 0x98a   : > { %v1402_v62 = vadd.f32 %v1602_v8, %v1401_v61 }
 0x98b   : > { %v1724_v63 = vpop.f32.mrf.mxu1 }
 0x98c   : > { %v1407_v1 = vadd.f32 %v1402_v62, %v2537_v24 }
 0x98d   : > { %v1404_v2 = vpop.f32.mrf.mxu1 }
 0x98e   : > { %1408 = vst.msk [vmem:[%s567_s7] sm:$0xff] %vm585_vm0, %v1407_v1 }
 0x98f   : > { %v1725_v3 = vpop.f32.mrf.mxu1 }
 0x990   : > { %2080 = shalt.err (!%p2077_p3)
}
 0x991   : > { %s2081_s21 = scalar_lea.hbm %s2578_s18, 128  ;;  %s2085_s14 = scalar_lea.hbm %s2675_s23, 256 }
 0x992   : > { %p2082_p6 = scmp.ne.s32.totalorder %s2578_s18, %s2081_s21  ;;  %p2086_p10 = scmp.lt.s32.totalorder %s2578_s18, %s2675_s23 }
 0x993   : > { %p2087_p13 = scmp.lt.s32.totalorder %s2085_s14, %s2081_s21 }
 0x994   : > { %p2083_p4 = pnand %p2082_p6, %p2676_p5 }
 0x995   : > { %p2088_p0 = por %p2087_p13, %p2086_p10 }
 0x996   : > { %p2084_p9 = pneg %p2083_p4 }
 0x998   : > { %p2089_p2 = pnand %p2088_p0, %p2084_p9 }
 0x99a   : > { %2092 = shalt.err (!%p2089_p2)
}
 0x99b   : > { %1752 = dma.vmem_to_hbm [thread:$0]  (%p2676_p5), %s2580_s3, 128, %s2578_s18, %s1410_s19  }
 0x99c PF: > { %s1435_s7 = sand.u32 1, %s2131_s29   ;;  %p2677_p8 = scmp.ne.s32.totalorder %s2665_s24, 0 }
 0x99d   : > { %p2678_p7 = scmp.ge.s32.totalorder %s2143_s16, 2  ;;  %s1436_s15 = scalar_lea.sflag [#allocation4], %s1435_s7 }
 0x99f   : > { %p1778_p11 = pnand %p2678_p7, %p2677_p8 }
 0x9a1   : > { %p1779_p12 = pneg %p1778_p11 }
 0x9a3   : > { %2126 = dma.done.wait (%p1779_p12), %s1436_s15, 128  }
 0x9a4   : > { %2128 = vsyncadd (%p1779_p12), %s1436_s15, 4294967168  ;;  %s2679_s20 = sld [smem:[#allocation20_spill]]  ;;  %p30_p1 = scmp.ge.s32.totalorder %s2352_s25, 4  }
 0x9a5   : > { %s2680_s15 = sld [smem:[#allocation21_spill]]  ;;  %s2681_s29 = smov %s2135_s30 }
 0x9a6   : > { %s2683_s16 = smov %s2352_s25  ;;  %32 = sbr.rel (!%p30_p1) target bundleno = 16 (0x10), region = 148 }
 0x9aa   : > { %s2682_s30 = smov %s2679_s20 }
 0x9ab   :  { %1441 = vsyncpa [#allocation3], 1 }
 0x9ac   :  { %1443 = vsyncpa [#allocation3 + $0x1], 1 }
 0x9ad   :  { %1444 = vsyncpa [#allocation6], 1 }
 0x9ae   :  { %1445 = vsyncpa [#allocation9], 1 }
 0x9af   :  { %1446 = vsyncpa [#allocation12], 1 }
 0x9b0   :  { %1447 = vsyncpa [#allocation4], 1 }
 0x9b1   :  { %1449 = vsyncpa [#allocation4 + $0x1], 1 }

</bundles_post_ra>
